<compile_context>
chip_gen: v7x
topology: tpu7x:2x2x1
jax: 0.10.0
libtpu: 0.0.40
codegen_flags: <defaults>
</compile_context>

<pallas_src>
import jax
import jax.numpy as jnp
import numpy as np
from jax.experimental import pallas as pl
from jax.experimental.pallas import tpu as pltpu

C_REAL = 3  # Conv2d(3, 3, 1)


def block_kernel(x_ref, w_ref, b_ref, out0_ref, out1_ref, out2_ref, out4_ref):
    # x_ref: (3, P) f32 VMEM (channels in sublanes, spatial in lanes)
    # w_ref: (45,) f32 SMEM  -- layer-major, then (cout, cin) row-major
    # b_ref: (15,) f32 SMEM  -- layer-major, then cout
    # Channels travel as a tuple of three (1, P) rows: each "1x1 conv" is 9
    # scalar-broadcast FMAs on the VPU, with no sublane re-slicing / concat
    # between layers.
    x_rows = tuple(x_ref[c:c + 1, :] for c in range(C_REAL))

    def conv1x1(rows, layer):
        out_rows = []
        for co in range(C_REAL):
            r = rows[0] * w_ref[layer * 9 + co * 3 + 0]
            r = r + rows[1] * w_ref[layer * 9 + co * 3 + 1]
            r = r + rows[2] * w_ref[layer * 9 + co * 3 + 2]
            out_rows.append(r + b_ref[layer * 3 + co])
        return tuple(out_rows)

    def total_sum(rows):
        return jnp.sum(rows[0]) + jnp.sum(rows[1]) + jnp.sum(rows[2])

    out0 = conv1x1(x_rows, 0)      # += np.sum([]) == 0.0
    out1 = conv1x1(out0, 1)        # += np.sum([]) == 0.0

    s0 = total_sum(out0)
    s1 = total_sum(out1)

    # out2 in the state "conv3(out1) + sum(out0)" -- this is what conv4 sees.
    out2_base = tuple(r + s0 for r in conv1x1(out1, 2))
    out3 = conv1x1(out2_base, 3)
    out4 = conv1x1(out3, 4)

    # Fuse the two remaining in-place scalar adds into one broadcast add:
    #   out2_a     = out2_base + (s0 + s1)
    #   out2_final = out2_a + (s0 + s1 + sum(out2_a))
    # with sum(out2_a) = sum(out2_base) + n_elems * (s0 + s1).
    n_elems = float(C_REAL * out2_base[0].shape[-1])
    s2 = total_sum(out2_base) + n_elems * (s0 + s1)
    out2 = tuple(r + (2.0 * (s0 + s1) + s2) for r in out2_base)

    out0_ref[...] = jnp.concatenate(out0, axis=0)
    out1_ref[...] = jnp.concatenate(out1, axis=0)
    out2_ref[...] = jnp.concatenate(out2, axis=0)
    out4_ref[...] = jnp.concatenate(out4, axis=0)


@jax.jit
def block_forward(x_nchw, weights, biases):
    """weights[i]: (Cout, Cin, 1, 1); biases[i]: (Cout,). Returns (out4, res)."""
    N, C, H, W = x_nchw.shape
    assert C == C_REAL
    P = N * H * W

    # NCHW -> channels-in-sublanes / spatial-in-lanes (C, P); no zero padding.
    x_cf = jnp.transpose(x_nchw, (1, 0, 2, 3)).reshape(C, P).astype(jnp.float32)

    # Pack the 5 layers' weights/biases compactly (single stack op each).
    w_flat = jnp.stack([w[:, :, 0, 0] for w in weights]).astype(jnp.float32).reshape(-1)  # (45,)
    b_flat = jnp.stack(biases).astype(jnp.float32).reshape(-1)                            # (15,)

    out0, out1, out2, out4 = pl.pallas_call(
        block_kernel,
        out_shape=[jax.ShapeDtypeStruct((C, P), jnp.float32)] * 4,
        in_specs=[
            pl.BlockSpec(memory_space=pltpu.MemorySpace.VMEM),   # x
            pl.BlockSpec(memory_space=pltpu.MemorySpace.SMEM),   # weights (scalars)
            pl.BlockSpec(memory_space=pltpu.MemorySpace.SMEM),   # biases (scalars)
        ],
        out_specs=[pl.BlockSpec(memory_space=pltpu.MemorySpace.VMEM)] * 4,
    )(x_cf, w_flat, b_flat)

    def unflat(z):  # (C, P) -> NCHW
        return jnp.transpose(z.reshape(C, N, H, W), (1, 0, 2, 3))

    out0, out1, out2, out4 = map(unflat, (out0, out1, out2, out4))
    # PyTorch's `res` ends up as [out0, out1, out2, out2, out2] (last 3 aliased).
    res = [out0, out1, out2, out2, out2]
    return out4, res


def ref_forward(x, weights, biases):
    """Pure-JAX reference mirroring the PyTorch forward (for validation)."""

    def conv(z, i):
        w = weights[i][:, :, 0, 0]  # (Cout, Cin)
        return jnp.einsum("oc,nchw->nohw", w, z) + biases[i][None, :, None, None]

    out0 = conv(x, 0)
    out1 = conv(out0, 1)
    out2 = conv(out1, 2) + jnp.sum(out0)
    out3 = conv(out2, 3)
    out2 = out2 + jnp.sum(out0) + jnp.sum(out1)
    out4 = conv(out3, 4)
    out2 = out2 + jnp.sum(out0) + jnp.sum(out1) + jnp.sum(out2)
    return out4, [out0, out1, out2, out2, out2]


if __name__ == "__main__":
    key = jax.random.PRNGKey(0)
    keys = jax.random.split(key, 11)
    x = jax.random.normal(keys[0], (2, 3, 16, 16), jnp.float32)

    # Deterministic parameter init (PyTorch-like uniform bound 1/sqrt(fan_in)).
    bound = 1.0 / float(np.sqrt(3.0))
    weights = [
        jax.random.uniform(keys[1 + 2 * i], (3, 3, 1, 1), jnp.float32, -bound, bound)
        for i in range(5)
    ]
    biases = [
        jax.random.uniform(keys[2 + 2 * i], (3,), jnp.float32, -bound, bound)
        for i in range(5)
    ]

    out4, res = block_forward(x, weights, biases)
    jax.block_until_ready(out4)
    jax.block_until_ready(res)

    ref_out4, ref_res = ref_forward(x, weights, biases)
    assert np.allclose(np.asarray(out4), np.asarray(ref_out4), rtol=2e-3, atol=2e-2)
    for a, b in zip(res, ref_res):
        assert np.allclose(np.asarray(a), np.asarray(b), rtol=2e-3, atol=2e-2)

    print("KERNEL_OK")
</pallas_src>

<mosaic_0001>
module attributes {stable_mosaic.version = 11 : i64} {
  func.func @block_kernel(%arg0: memref<3x512xf32, #tpu.memory_space<vmem>>, %arg1: memref<45xf32, #tpu.memory_space<smem>>, %arg2: memref<15xf32, #tpu.memory_space<smem>>, %arg3: memref<3x512xf32, #tpu.memory_space<vmem>>, %arg4: memref<3x512xf32, #tpu.memory_space<vmem>>, %arg5: memref<3x512xf32, #tpu.memory_space<vmem>>, %arg6: memref<3x512xf32, #tpu.memory_space<vmem>>) attributes {dimension_semantics = [], scalar_prefetch = 0 : i64, scratch_operands = 0 : i64, tpu.core_type = #tpu.core_type<tc>} {
    %c0 = arith.constant 0 : index
    %c0_0 = arith.constant 0 : index
    %0 = vector.load %arg0[%c0, %c0_0] : memref<3x512xf32, #tpu.memory_space<vmem>>, vector<1x512xf32>
    %c1 = arith.constant 1 : index
    %c0_1 = arith.constant 0 : index
    %1 = vector.load %arg0[%c1, %c0_1] : memref<3x512xf32, #tpu.memory_space<vmem>>, vector<1x512xf32>
    %c2 = arith.constant 2 : index
    %c0_2 = arith.constant 0 : index
    %2 = vector.load %arg0[%c2, %c0_2] : memref<3x512xf32, #tpu.memory_space<vmem>>, vector<1x512xf32>
    %c0_3 = arith.constant 0 : index
    %3 = memref.load %arg1[%c0_3] : memref<45xf32, #tpu.memory_space<smem>>
    %4 = vector.broadcast %3 : f32 to vector<1x512xf32>
    %5 = arith.mulf %0, %4 : vector<1x512xf32>
    %c1_4 = arith.constant 1 : index
    %6 = memref.load %arg1[%c1_4] : memref<45xf32, #tpu.memory_space<smem>>
    %7 = vector.broadcast %6 : f32 to vector<1x512xf32>
    %8 = arith.mulf %1, %7 : vector<1x512xf32>
    %9 = arith.addf %5, %8 : vector<1x512xf32>
    %c2_5 = arith.constant 2 : index
    %10 = memref.load %arg1[%c2_5] : memref<45xf32, #tpu.memory_space<smem>>
    %11 = vector.broadcast %10 : f32 to vector<1x512xf32>
    %12 = arith.mulf %2, %11 : vector<1x512xf32>
    %13 = arith.addf %9, %12 : vector<1x512xf32>
    %c0_6 = arith.constant 0 : index
    %14 = memref.load %arg2[%c0_6] : memref<15xf32, #tpu.memory_space<smem>>
    %15 = vector.broadcast %14 : f32 to vector<1x512xf32>
    %16 = arith.addf %13, %15 : vector<1x512xf32>
    %c3 = arith.constant 3 : index
    %17 = memref.load %arg1[%c3] : memref<45xf32, #tpu.memory_space<smem>>
    %18 = vector.broadcast %17 : f32 to vector<1x512xf32>
    %19 = arith.mulf %0, %18 : vector<1x512xf32>
    %c4 = arith.constant 4 : index
    %20 = memref.load %arg1[%c4] : memref<45xf32, #tpu.memory_space<smem>>
    %21 = vector.broadcast %20 : f32 to vector<1x512xf32>
    %22 = arith.mulf %1, %21 : vector<1x512xf32>
    %23 = arith.addf %19, %22 : vector<1x512xf32>
    %c5 = arith.constant 5 : index
    %24 = memref.load %arg1[%c5] : memref<45xf32, #tpu.memory_space<smem>>
    %25 = vector.broadcast %24 : f32 to vector<1x512xf32>
    %26 = arith.mulf %2, %25 : vector<1x512xf32>
    %27 = arith.addf %23, %26 : vector<1x512xf32>
    %c1_7 = arith.constant 1 : index
    %28 = memref.load %arg2[%c1_7] : memref<15xf32, #tpu.memory_space<smem>>
    %29 = vector.broadcast %28 : f32 to vector<1x512xf32>
    %30 = arith.addf %27, %29 : vector<1x512xf32>
    %c6 = arith.constant 6 : index
    %31 = memref.load %arg1[%c6] : memref<45xf32, #tpu.memory_space<smem>>
    %32 = vector.broadcast %31 : f32 to vector<1x512xf32>
    %33 = arith.mulf %0, %32 : vector<1x512xf32>
    %c7 = arith.constant 7 : index
    %34 = memref.load %arg1[%c7] : memref<45xf32, #tpu.memory_space<smem>>
    %35 = vector.broadcast %34 : f32 to vector<1x512xf32>
    %36 = arith.mulf %1, %35 : vector<1x512xf32>
    %37 = arith.addf %33, %36 : vector<1x512xf32>
    %c8 = arith.constant 8 : index
    %38 = memref.load %arg1[%c8] : memref<45xf32, #tpu.memory_space<smem>>
    %39 = vector.broadcast %38 : f32 to vector<1x512xf32>
    %40 = arith.mulf %2, %39 : vector<1x512xf32>
    %41 = arith.addf %37, %40 : vector<1x512xf32>
    %c2_8 = arith.constant 2 : index
    %42 = memref.load %arg2[%c2_8] : memref<15xf32, #tpu.memory_space<smem>>
    %43 = vector.broadcast %42 : f32 to vector<1x512xf32>
    %44 = arith.addf %41, %43 : vector<1x512xf32>
    %c9 = arith.constant 9 : index
    %45 = memref.load %arg1[%c9] : memref<45xf32, #tpu.memory_space<smem>>
    %46 = vector.broadcast %45 : f32 to vector<1x512xf32>
    %47 = arith.mulf %16, %46 : vector<1x512xf32>
    %c10 = arith.constant 10 : index
    %48 = memref.load %arg1[%c10] : memref<45xf32, #tpu.memory_space<smem>>
    %49 = vector.broadcast %48 : f32 to vector<1x512xf32>
    %50 = arith.mulf %30, %49 : vector<1x512xf32>
    %51 = arith.addf %47, %50 : vector<1x512xf32>
    %c11 = arith.constant 11 : index
    %52 = memref.load %arg1[%c11] : memref<45xf32, #tpu.memory_space<smem>>
    %53 = vector.broadcast %52 : f32 to vector<1x512xf32>
    %54 = arith.mulf %44, %53 : vector<1x512xf32>
    %55 = arith.addf %51, %54 : vector<1x512xf32>
    %c3_9 = arith.constant 3 : index
    %56 = memref.load %arg2[%c3_9] : memref<15xf32, #tpu.memory_space<smem>>
    %57 = vector.broadcast %56 : f32 to vector<1x512xf32>
    %58 = arith.addf %55, %57 : vector<1x512xf32>
    %c12 = arith.constant 12 : index
    %59 = memref.load %arg1[%c12] : memref<45xf32, #tpu.memory_space<smem>>
    %60 = vector.broadcast %59 : f32 to vector<1x512xf32>
    %61 = arith.mulf %16, %60 : vector<1x512xf32>
    %c13 = arith.constant 13 : index
    %62 = memref.load %arg1[%c13] : memref<45xf32, #tpu.memory_space<smem>>
    %63 = vector.broadcast %62 : f32 to vector<1x512xf32>
    %64 = arith.mulf %30, %63 : vector<1x512xf32>
    %65 = arith.addf %61, %64 : vector<1x512xf32>
    %c14 = arith.constant 14 : index
    %66 = memref.load %arg1[%c14] : memref<45xf32, #tpu.memory_space<smem>>
    %67 = vector.broadcast %66 : f32 to vector<1x512xf32>
    %68 = arith.mulf %44, %67 : vector<1x512xf32>
    %69 = arith.addf %65, %68 : vector<1x512xf32>
    %c4_10 = arith.constant 4 : index
    %70 = memref.load %arg2[%c4_10] : memref<15xf32, #tpu.memory_space<smem>>
    %71 = vector.broadcast %70 : f32 to vector<1x512xf32>
    %72 = arith.addf %69, %71 : vector<1x512xf32>
    %c15 = arith.constant 15 : index
    %73 = memref.load %arg1[%c15] : memref<45xf32, #tpu.memory_space<smem>>
    %74 = vector.broadcast %73 : f32 to vector<1x512xf32>
    %75 = arith.mulf %16, %74 : vector<1x512xf32>
    %c16 = arith.constant 16 : index
    %76 = memref.load %arg1[%c16] : memref<45xf32, #tpu.memory_space<smem>>
    %77 = vector.broadcast %76 : f32 to vector<1x512xf32>
    %78 = arith.mulf %30, %77 : vector<1x512xf32>
    %79 = arith.addf %75, %78 : vector<1x512xf32>
    %c17 = arith.constant 17 : index
    %80 = memref.load %arg1[%c17] : memref<45xf32, #tpu.memory_space<smem>>
    %81 = vector.broadcast %80 : f32 to vector<1x512xf32>
    %82 = arith.mulf %44, %81 : vector<1x512xf32>
    %83 = arith.addf %79, %82 : vector<1x512xf32>
    %c5_11 = arith.constant 5 : index
    %84 = memref.load %arg2[%c5_11] : memref<15xf32, #tpu.memory_space<smem>>
    %85 = vector.broadcast %84 : f32 to vector<1x512xf32>
    %86 = arith.addf %83, %85 : vector<1x512xf32>
    %87 = vector.shape_cast %16 : vector<1x512xf32> to vector<1x1x512xf32>
    %cst = arith.constant dense<0.000000e+00> : vector<1xf32>
    %88 = vector.multi_reduction <add>, %87, %cst [1, 2] : vector<1x1x512xf32> to vector<1xf32>
    %89 = vector.shape_cast %88 : vector<1xf32> to vector<1x1x1xf32>
    %90 = vector.extract %89[0, 0, 0] : f32 from vector<1x1x1xf32>
    %91 = vector.shape_cast %30 : vector<1x512xf32> to vector<1x1x512xf32>
    %cst_12 = arith.constant dense<0.000000e+00> : vector<1xf32>
    %92 = vector.multi_reduction <add>, %91, %cst_12 [1, 2] : vector<1x1x512xf32> to vector<1xf32>
    %93 = vector.shape_cast %92 : vector<1xf32> to vector<1x1x1xf32>
    %94 = vector.extract %93[0, 0, 0] : f32 from vector<1x1x1xf32>
    %95 = arith.addf %90, %94 : f32
    %96 = vector.shape_cast %44 : vector<1x512xf32> to vector<1x1x512xf32>
    %cst_13 = arith.constant dense<0.000000e+00> : vector<1xf32>
    %97 = vector.multi_reduction <add>, %96, %cst_13 [1, 2] : vector<1x1x512xf32> to vector<1xf32>
    %98 = vector.shape_cast %97 : vector<1xf32> to vector<1x1x1xf32>
    %99 = vector.extract %98[0, 0, 0] : f32 from vector<1x1x1xf32>
    %100 = arith.addf %95, %99 : f32
    %101 = vector.shape_cast %58 : vector<1x512xf32> to vector<1x1x512xf32>
    %cst_14 = arith.constant dense<0.000000e+00> : vector<1xf32>
    %102 = vector.multi_reduction <add>, %101, %cst_14 [1, 2] : vector<1x1x512xf32> to vector<1xf32>
    %103 = vector.shape_cast %102 : vector<1xf32> to vector<1x1x1xf32>
    %104 = vector.extract %103[0, 0, 0] : f32 from vector<1x1x1xf32>
    %105 = vector.shape_cast %72 : vector<1x512xf32> to vector<1x1x512xf32>
    %cst_15 = arith.constant dense<0.000000e+00> : vector<1xf32>
    %106 = vector.multi_reduction <add>, %105, %cst_15 [1, 2] : vector<1x1x512xf32> to vector<1xf32>
    %107 = vector.shape_cast %106 : vector<1xf32> to vector<1x1x1xf32>
    %108 = vector.extract %107[0, 0, 0] : f32 from vector<1x1x1xf32>
    %109 = arith.addf %104, %108 : f32
    %110 = vector.shape_cast %86 : vector<1x512xf32> to vector<1x1x512xf32>
    %cst_16 = arith.constant dense<0.000000e+00> : vector<1xf32>
    %111 = vector.multi_reduction <add>, %110, %cst_16 [1, 2] : vector<1x1x512xf32> to vector<1xf32>
    %112 = vector.shape_cast %111 : vector<1xf32> to vector<1x1x1xf32>
    %113 = vector.extract %112[0, 0, 0] : f32 from vector<1x1x1xf32>
    %114 = arith.addf %109, %113 : f32
    %c18 = arith.constant 18 : index
    %115 = memref.load %arg1[%c18] : memref<45xf32, #tpu.memory_space<smem>>
    %116 = vector.broadcast %115 : f32 to vector<1x512xf32>
    %117 = arith.mulf %58, %116 : vector<1x512xf32>
    %c19 = arith.constant 19 : index
    %118 = memref.load %arg1[%c19] : memref<45xf32, #tpu.memory_space<smem>>
    %119 = vector.broadcast %118 : f32 to vector<1x512xf32>
    %120 = arith.mulf %72, %119 : vector<1x512xf32>
    %121 = arith.addf %117, %120 : vector<1x512xf32>
    %c20 = arith.constant 20 : index
    %122 = memref.load %arg1[%c20] : memref<45xf32, #tpu.memory_space<smem>>
    %123 = vector.broadcast %122 : f32 to vector<1x512xf32>
    %124 = arith.mulf %86, %123 : vector<1x512xf32>
    %125 = arith.addf %121, %124 : vector<1x512xf32>
    %c6_17 = arith.constant 6 : index
    %126 = memref.load %arg2[%c6_17] : memref<15xf32, #tpu.memory_space<smem>>
    %127 = vector.broadcast %126 : f32 to vector<1x512xf32>
    %128 = arith.addf %125, %127 : vector<1x512xf32>
    %c21 = arith.constant 21 : index
    %129 = memref.load %arg1[%c21] : memref<45xf32, #tpu.memory_space<smem>>
    %130 = vector.broadcast %129 : f32 to vector<1x512xf32>
    %131 = arith.mulf %58, %130 : vector<1x512xf32>
    %c22 = arith.constant 22 : index
    %132 = memref.load %arg1[%c22] : memref<45xf32, #tpu.memory_space<smem>>
    %133 = vector.broadcast %132 : f32 to vector<1x512xf32>
    %134 = arith.mulf %72, %133 : vector<1x512xf32>
    %135 = arith.addf %131, %134 : vector<1x512xf32>
    %c23 = arith.constant 23 : index
    %136 = memref.load %arg1[%c23] : memref<45xf32, #tpu.memory_space<smem>>
    %137 = vector.broadcast %136 : f32 to vector<1x512xf32>
    %138 = arith.mulf %86, %137 : vector<1x512xf32>
    %139 = arith.addf %135, %138 : vector<1x512xf32>
    %c7_18 = arith.constant 7 : index
    %140 = memref.load %arg2[%c7_18] : memref<15xf32, #tpu.memory_space<smem>>
    %141 = vector.broadcast %140 : f32 to vector<1x512xf32>
    %142 = arith.addf %139, %141 : vector<1x512xf32>
    %c24 = arith.constant 24 : index
    %143 = memref.load %arg1[%c24] : memref<45xf32, #tpu.memory_space<smem>>
    %144 = vector.broadcast %143 : f32 to vector<1x512xf32>
    %145 = arith.mulf %58, %144 : vector<1x512xf32>
    %c25 = arith.constant 25 : index
    %146 = memref.load %arg1[%c25] : memref<45xf32, #tpu.memory_space<smem>>
    %147 = vector.broadcast %146 : f32 to vector<1x512xf32>
    %148 = arith.mulf %72, %147 : vector<1x512xf32>
    %149 = arith.addf %145, %148 : vector<1x512xf32>
    %c26 = arith.constant 26 : index
    %150 = memref.load %arg1[%c26] : memref<45xf32, #tpu.memory_space<smem>>
    %151 = vector.broadcast %150 : f32 to vector<1x512xf32>
    %152 = arith.mulf %86, %151 : vector<1x512xf32>
    %153 = arith.addf %149, %152 : vector<1x512xf32>
    %c8_19 = arith.constant 8 : index
    %154 = memref.load %arg2[%c8_19] : memref<15xf32, #tpu.memory_space<smem>>
    %155 = vector.broadcast %154 : f32 to vector<1x512xf32>
    %156 = arith.addf %153, %155 : vector<1x512xf32>
    %157 = vector.broadcast %100 : f32 to vector<1x512xf32>
    %158 = arith.addf %128, %157 : vector<1x512xf32>
    %159 = vector.broadcast %100 : f32 to vector<1x512xf32>
    %160 = arith.addf %142, %159 : vector<1x512xf32>
    %161 = vector.broadcast %100 : f32 to vector<1x512xf32>
    %162 = arith.addf %156, %161 : vector<1x512xf32>
    %c27 = arith.constant 27 : index
    %163 = memref.load %arg1[%c27] : memref<45xf32, #tpu.memory_space<smem>>
    %164 = vector.broadcast %163 : f32 to vector<1x512xf32>
    %165 = arith.mulf %158, %164 : vector<1x512xf32>
    %c28 = arith.constant 28 : index
    %166 = memref.load %arg1[%c28] : memref<45xf32, #tpu.memory_space<smem>>
    %167 = vector.broadcast %166 : f32 to vector<1x512xf32>
    %168 = arith.mulf %160, %167 : vector<1x512xf32>
    %169 = arith.addf %165, %168 : vector<1x512xf32>
    %c29 = arith.constant 29 : index
    %170 = memref.load %arg1[%c29] : memref<45xf32, #tpu.memory_space<smem>>
    %171 = vector.broadcast %170 : f32 to vector<1x512xf32>
    %172 = arith.mulf %162, %171 : vector<1x512xf32>
    %173 = arith.addf %169, %172 : vector<1x512xf32>
    %c9_20 = arith.constant 9 : index
    %174 = memref.load %arg2[%c9_20] : memref<15xf32, #tpu.memory_space<smem>>
    %175 = vector.broadcast %174 : f32 to vector<1x512xf32>
    %176 = arith.addf %173, %175 : vector<1x512xf32>
    %c30 = arith.constant 30 : index
    %177 = memref.load %arg1[%c30] : memref<45xf32, #tpu.memory_space<smem>>
    %178 = vector.broadcast %177 : f32 to vector<1x512xf32>
    %179 = arith.mulf %158, %178 : vector<1x512xf32>
    %c31 = arith.constant 31 : index
    %180 = memref.load %arg1[%c31] : memref<45xf32, #tpu.memory_space<smem>>
    %181 = vector.broadcast %180 : f32 to vector<1x512xf32>
    %182 = arith.mulf %160, %181 : vector<1x512xf32>
    %183 = arith.addf %179, %182 : vector<1x512xf32>
    %c32 = arith.constant 32 : index
    %184 = memref.load %arg1[%c32] : memref<45xf32, #tpu.memory_space<smem>>
    %185 = vector.broadcast %184 : f32 to vector<1x512xf32>
    %186 = arith.mulf %162, %185 : vector<1x512xf32>
    %187 = arith.addf %183, %186 : vector<1x512xf32>
    %c10_21 = arith.constant 10 : index
    %188 = memref.load %arg2[%c10_21] : memref<15xf32, #tpu.memory_space<smem>>
    %189 = vector.broadcast %188 : f32 to vector<1x512xf32>
    %190 = arith.addf %187, %189 : vector<1x512xf32>
    %c33 = arith.constant 33 : index
    %191 = memref.load %arg1[%c33] : memref<45xf32, #tpu.memory_space<smem>>
    %192 = vector.broadcast %191 : f32 to vector<1x512xf32>
    %193 = arith.mulf %158, %192 : vector<1x512xf32>
    %c34 = arith.constant 34 : index
    %194 = memref.load %arg1[%c34] : memref<45xf32, #tpu.memory_space<smem>>
    %195 = vector.broadcast %194 : f32 to vector<1x512xf32>
    %196 = arith.mulf %160, %195 : vector<1x512xf32>
    %197 = arith.addf %193, %196 : vector<1x512xf32>
    %c35 = arith.constant 35 : index
    %198 = memref.load %arg1[%c35] : memref<45xf32, #tpu.memory_space<smem>>
    %199 = vector.broadcast %198 : f32 to vector<1x512xf32>
    %200 = arith.mulf %162, %199 : vector<1x512xf32>
    %201 = arith.addf %197, %200 : vector<1x512xf32>
    %c11_22 = arith.constant 11 : index
    %202 = memref.load %arg2[%c11_22] : memref<15xf32, #tpu.memory_space<smem>>
    %203 = vector.broadcast %202 : f32 to vector<1x512xf32>
    %204 = arith.addf %201, %203 : vector<1x512xf32>
    %c36 = arith.constant 36 : index
    %205 = memref.load %arg1[%c36] : memref<45xf32, #tpu.memory_space<smem>>
    %206 = vector.broadcast %205 : f32 to vector<1x512xf32>
    %207 = arith.mulf %176, %206 : vector<1x512xf32>
    %c37 = arith.constant 37 : index
    %208 = memref.load %arg1[%c37] : memref<45xf32, #tpu.memory_space<smem>>
    %209 = vector.broadcast %208 : f32 to vector<1x512xf32>
    %210 = arith.mulf %190, %209 : vector<1x512xf32>
    %211 = arith.addf %207, %210 : vector<1x512xf32>
    %c38 = arith.constant 38 : index
    %212 = memref.load %arg1[%c38] : memref<45xf32, #tpu.memory_space<smem>>
    %213 = vector.broadcast %212 : f32 to vector<1x512xf32>
    %214 = arith.mulf %204, %213 : vector<1x512xf32>
    %215 = arith.addf %211, %214 : vector<1x512xf32>
    %c12_23 = arith.constant 12 : index
    %216 = memref.load %arg2[%c12_23] : memref<15xf32, #tpu.memory_space<smem>>
    %217 = vector.broadcast %216 : f32 to vector<1x512xf32>
    %218 = arith.addf %215, %217 : vector<1x512xf32>
    %c39 = arith.constant 39 : index
    %219 = memref.load %arg1[%c39] : memref<45xf32, #tpu.memory_space<smem>>
    %220 = vector.broadcast %219 : f32 to vector<1x512xf32>
    %221 = arith.mulf %176, %220 : vector<1x512xf32>
    %c40 = arith.constant 40 : index
    %222 = memref.load %arg1[%c40] : memref<45xf32, #tpu.memory_space<smem>>
    %223 = vector.broadcast %222 : f32 to vector<1x512xf32>
    %224 = arith.mulf %190, %223 : vector<1x512xf32>
    %225 = arith.addf %221, %224 : vector<1x512xf32>
    %c41 = arith.constant 41 : index
    %226 = memref.load %arg1[%c41] : memref<45xf32, #tpu.memory_space<smem>>
    %227 = vector.broadcast %226 : f32 to vector<1x512xf32>
    %228 = arith.mulf %204, %227 : vector<1x512xf32>
    %229 = arith.addf %225, %228 : vector<1x512xf32>
    %c13_24 = arith.constant 13 : index
    %230 = memref.load %arg2[%c13_24] : memref<15xf32, #tpu.memory_space<smem>>
    %231 = vector.broadcast %230 : f32 to vector<1x512xf32>
    %232 = arith.addf %229, %231 : vector<1x512xf32>
    %c42 = arith.constant 42 : index
    %233 = memref.load %arg1[%c42] : memref<45xf32, #tpu.memory_space<smem>>
    %234 = vector.broadcast %233 : f32 to vector<1x512xf32>
    %235 = arith.mulf %176, %234 : vector<1x512xf32>
    %c43 = arith.constant 43 : index
    %236 = memref.load %arg1[%c43] : memref<45xf32, #tpu.memory_space<smem>>
    %237 = vector.broadcast %236 : f32 to vector<1x512xf32>
    %238 = arith.mulf %190, %237 : vector<1x512xf32>
    %239 = arith.addf %235, %238 : vector<1x512xf32>
    %c44 = arith.constant 44 : index
    %240 = memref.load %arg1[%c44] : memref<45xf32, #tpu.memory_space<smem>>
    %241 = vector.broadcast %240 : f32 to vector<1x512xf32>
    %242 = arith.mulf %204, %241 : vector<1x512xf32>
    %243 = arith.addf %239, %242 : vector<1x512xf32>
    %c14_25 = arith.constant 14 : index
    %244 = memref.load %arg2[%c14_25] : memref<15xf32, #tpu.memory_space<smem>>
    %245 = vector.broadcast %244 : f32 to vector<1x512xf32>
    %246 = arith.addf %243, %245 : vector<1x512xf32>
    %247 = vector.shape_cast %158 : vector<1x512xf32> to vector<1x1x512xf32>
    %cst_26 = arith.constant dense<0.000000e+00> : vector<1xf32>
    %248 = vector.multi_reduction <add>, %247, %cst_26 [1, 2] : vector<1x1x512xf32> to vector<1xf32>
    %249 = vector.shape_cast %248 : vector<1xf32> to vector<1x1x1xf32>
    %250 = vector.extract %249[0, 0, 0] : f32 from vector<1x1x1xf32>
    %251 = vector.shape_cast %160 : vector<1x512xf32> to vector<1x1x512xf32>
    %cst_27 = arith.constant dense<0.000000e+00> : vector<1xf32>
    %252 = vector.multi_reduction <add>, %251, %cst_27 [1, 2] : vector<1x1x512xf32> to vector<1xf32>
    %253 = vector.shape_cast %252 : vector<1xf32> to vector<1x1x1xf32>
    %254 = vector.extract %253[0, 0, 0] : f32 from vector<1x1x1xf32>
    %255 = arith.addf %250, %254 : f32
    %256 = vector.shape_cast %162 : vector<1x512xf32> to vector<1x1x512xf32>
    %cst_28 = arith.constant dense<0.000000e+00> : vector<1xf32>
    %257 = vector.multi_reduction <add>, %256, %cst_28 [1, 2] : vector<1x1x512xf32> to vector<1xf32>
    %258 = vector.shape_cast %257 : vector<1xf32> to vector<1x1x1xf32>
    %259 = vector.extract %258[0, 0, 0] : f32 from vector<1x1x1xf32>
    %260 = arith.addf %255, %259 : f32
    %261 = arith.addf %100, %114 : f32
    %cst_29 = arith.constant 1.536000e+03 : f32
    %262 = arith.mulf %cst_29, %261 : f32
    %263 = arith.addf %260, %262 : f32
    %264 = arith.addf %100, %114 : f32
    %cst_30 = arith.constant 2.000000e+00 : f32
    %265 = arith.mulf %cst_30, %264 : f32
    %266 = arith.addf %265, %263 : f32
    %267 = vector.broadcast %266 : f32 to vector<1x512xf32>
    %268 = arith.addf %158, %267 : vector<1x512xf32>
    %269 = arith.addf %100, %114 : f32
    %cst_31 = arith.constant 2.000000e+00 : f32
    %270 = arith.mulf %cst_31, %269 : f32
    %271 = arith.addf %270, %263 : f32
    %272 = vector.broadcast %271 : f32 to vector<1x512xf32>
    %273 = arith.addf %160, %272 : vector<1x512xf32>
    %274 = arith.addf %100, %114 : f32
    %cst_32 = arith.constant 2.000000e+00 : f32
    %275 = arith.mulf %cst_32, %274 : f32
    %276 = arith.addf %275, %263 : f32
    %277 = vector.broadcast %276 : f32 to vector<1x512xf32>
    %278 = arith.addf %162, %277 : vector<1x512xf32>
    %279 = tpu.concatenate %16, %30, %44 in 0 : vector<1x512xf32>, vector<1x512xf32>, vector<1x512xf32> -> vector<3x512xf32>
    %c0_33 = arith.constant 0 : index
    %c0_34 = arith.constant 0 : index
    %280 = vector.load %arg3[%c0_33, %c0_34] : memref<3x512xf32, #tpu.memory_space<vmem>>, vector<3x512xf32>
    tpu.vector_store %arg3[%c0_33, %c0_34], %279 {strides = array<i32>} : memref<3x512xf32, #tpu.memory_space<vmem>>, vector<3x512xf32>,
    %281 = tpu.concatenate %58, %72, %86 in 0 : vector<1x512xf32>, vector<1x512xf32>, vector<1x512xf32> -> vector<3x512xf32>
    %c0_35 = arith.constant 0 : index
    %c0_36 = arith.constant 0 : index
    %282 = vector.load %arg4[%c0_35, %c0_36] : memref<3x512xf32, #tpu.memory_space<vmem>>, vector<3x512xf32>
    tpu.vector_store %arg4[%c0_35, %c0_36], %281 {strides = array<i32>} : memref<3x512xf32, #tpu.memory_space<vmem>>, vector<3x512xf32>,
    %283 = tpu.concatenate %268, %273, %278 in 0 : vector<1x512xf32>, vector<1x512xf32>, vector<1x512xf32> -> vector<3x512xf32>
    %c0_37 = arith.constant 0 : index
    %c0_38 = arith.constant 0 : index
    %284 = vector.load %arg5[%c0_37, %c0_38] : memref<3x512xf32, #tpu.memory_space<vmem>>, vector<3x512xf32>
    tpu.vector_store %arg5[%c0_37, %c0_38], %283 {strides = array<i32>} : memref<3x512xf32, #tpu.memory_space<vmem>>, vector<3x512xf32>,
    %285 = tpu.concatenate %218, %232, %246 in 0 : vector<1x512xf32>, vector<1x512xf32>, vector<1x512xf32> -> vector<3x512xf32>
    %c0_39 = arith.constant 0 : index
    %c0_40 = arith.constant 0 : index
    %286 = vector.load %arg6[%c0_39, %c0_40] : memref<3x512xf32, #tpu.memory_space<vmem>>, vector<3x512xf32>
    tpu.vector_store %arg6[%c0_39, %c0_40], %285 {strides = array<i32>} : memref<3x512xf32, #tpu.memory_space<vmem>>, vector<3x512xf32>,
    return
  }
}

</mosaic_0001>

<bundles_post_ra>
// kernel: block_forward.1
= control target key start
LH: loop header
LB: loop body
LE: loop exit
PB: predicated region body
PF: predicated region fallthrough
CT: control target
= control target key end

     0   :  { %12 = vsyncpa [#allocation3], 0  ;;  %s1378_s0 = inlined_call_operand.vmem [shape: f32[3,512], index: 0, kind: input, shape index: {}]   ;;  %s1379_s1 = inlined_call_operand.vmem [shape: f32[45], index: 1, kind: input, shape index: {}]   ;;  %s1380_s2 = inlined_call_operand.vmem [shape: f32[15], index: 2, kind: input, shape index: {}]   ;;  %s1381_s3 = inlined_call_operand.vmem [shape: f32[3,512], index: 3, kind: output, shape index: {0}]   ;;  %s1382_s4 = inlined_call_operand.vmem [shape: f32[3,512], index: 4, kind: output, shape index: {1}]   ;;  %s1383_s5 = inlined_call_operand.vmem [shape: f32[3,512], index: 5, kind: output, shape index: {2}]   ;;  %s1384_s6 = inlined_call_operand.vmem [shape: f32[3,512], index: 6, kind: output, shape index: {3}]  }
   0x1   :  { %s22_s23 = sshll.u32 %s1379_s1, 4  ;;  %s23_s23 = int_to_ptr.vmem [resolvable:$true] %s22_s23 }
   0x2   :  { %13 = vsyncpa [#allocation5], 0  ;;  %s32_s26 = sshll.u32 %s1380_s2, 4  ;;  %s908_s27 = scalar_lea.vmem %s23_s23, 16  ;;  %s33_s26 = int_to_ptr.vmem [resolvable:$true] %s32_s26 }
   0x3   :  { %p909_p0 = scmp.ne.s32.totalorder %s23_s23, %s908_s27  ;;  %p913_p1 = scmp.lt.s32.totalorder %s23_s23, %s23_s23 }
   0x4   :  { %p914_p2 = scmp.lt.s32.totalorder %s908_s27, %s908_s27 }
   0x6   :  { %p915_p3 = por %p914_p2, %p913_p1 }
   0x8   :  { %p916_p4 = pnand %p915_p3, %p909_p0 }
   0xa   :  { %919 = shalt.err (!%p916_p4)
}
   0xb   :  { %s936_s28 = smov [#allocation2]   ;;  %s920_s29 = scalar_lea.vmem %s33_s26, 16 }
   0xc   :  { %25 = dma.vmem_to_smem %s23_s23, 16, %s936_s28, [#allocation3]  }
   0xd   :  { %p921_p5 = scmp.ne.s32.totalorder %s33_s26, %s920_s29  ;;  %p925_p6 = scmp.lt.s32.totalorder %s33_s26, %s33_s26 }
   0xe   :  { %p926_p7 = scmp.lt.s32.totalorder %s920_s29, %s920_s29 }
  0x10   :  { %p927_p8 = por %p926_p7, %p925_p6 }
  0x12   :  { %p928_p9 = pnand %p927_p8, %p921_p5 }
  0x14   :  { %931 = shalt.err (!%p928_p9)
}
  0x15   :  { %s937_s1 = smov [#allocation4]  }
  0x16   :  { %35 = dma.vmem_to_smem %s33_s26, 16, %s937_s1, [#allocation5]  }
  0x17   :  { %932 = dma.done.wait [#allocation3], 16  }
  0x18   :  { %933 = vsyncadd [#allocation3], 4294967280 }
  0x19   :  { %934 = dma.done.wait [#allocation5], 16  }
  0x1a   :  { %935 = vsyncadd [#allocation5], 4294967280 }
  0x1b   :  { %42 = sfence }
  0x1c   :  { %s836_s2 = sld [smem:[#allocation2 + $0x6]]  ;;  %v133_v0 = vlaneseq  ;;  %s837_s30 = sld [smem:[#allocation2 + $0x7]]  ;;  %v43_v1 = vld [vmem:[%s1378_s0] ss:$4 sm:$0xf]  ;;  %vm153_vm0 = vcmask 1040384  }
  0x1d   :  { %s838_s7 = sld [smem:[#allocation2 + $0x8]]  ;;  %v828_v2 = vld [vmem:[%s1378_s0 + $0x1] ss:$4 sm:$0xf]  ;;  %s988_s15 = sld [smem:[#allocation4 + $0x2]]  ;;  %vm615_vm1 = vcmask 1041408  }
  0x1e   :  { %s48_s10 = sld [smem:[#allocation2]]  ;;  %v829_v3 = vld [vmem:[%s1378_s0 + $0x2] ss:$4 sm:$0xf]  ;;  %s830_s16 = sld [smem:[#allocation2 + $0x1]]  ;;  %v134_v4 = vshrl.u32 %v133_v0, 7 }
  0x1f   :  { %s990_s17 = sld [smem:[#allocation2 + $0x2]]  ;;  %s992_s18 = sld [smem:[#allocation4]] }
  0x20   :  { %s994_s19 = sld [smem:[#allocation2 + $0x3]]  ;;  %s996_s20 = sld [smem:[#allocation2 + $0x4]]  ;;  %v1006_v11 = vsub.s32 0, %v134_v4  ;;  %v1010_v13 = vsub.s32 1, %v134_v4  ;;  %v1012_v14 = vsub.s32 2, %v134_v4  ;;  %v1018_v18 = vsub.s32 3, %v134_v4 }
  0x21   :  { %s998_s21 = sld [smem:[#allocation2 + $0x5]]  ;;  %s1000_s22 = sld [smem:[#allocation4 + $0x1]] }
  0x22   :  { %v77_v5 = vstv %s836_s2  ;;  %v80_v7 = vstv %s837_s30  ;;  %s1002_s0 = sld [smem:[#allocation2 + $0x9]]  ;;  %s1004_s23 = sld [smem:[#allocation2 + $0xa]] }
  0x23   :  { %v78_v6 = vmul.f32 %v77_v5, %v43_v1  ;;  %v84_v8 = vstv %s838_s7  ;;  %v81_v9 = vmul.f32 %v828_v2, %v80_v7  ;;  %s1008_s24 = sld [smem:[#allocation2 + $0xb]]  ;;  %s1014_s25 = sld [smem:[#allocation2 + $0xc]]  ;;  %v88_v21 = vstv %s988_s15 }
  0x24   :  { %v85_v10 = vmul.f32 %v829_v3, %v84_v8  ;;  %v49_v12 = vstv %s48_s10  ;;  %v52_v16 = vstv %s830_s16  ;;  %s1016_s26 = sld [smem:[#allocation2 + $0xd]]  ;;  %s1021_s27 = sld [smem:[#allocation2 + $0xe]] }
  0x25   :  { %v50_v15 = vmul.f32 %v49_v12, %v43_v1  ;;  %v82_v17 = vadd.f32 %v81_v9, %v78_v6  ;;  %v53_v19 = vmul.f32 %v828_v2, %v52_v16  ;;  %v56_v20 = vstv %s990_s17  ;;  %s1061_s28 = sld [smem:[#allocation4 + $0x3]]  ;;  %s1067_s29 = sld [smem:[#allocation2 + $0xf]] }
  0x26   :  { %v57_v22 = vmul.f32 %v829_v3, %v56_v20  ;;  %v63_v23 = vstv %s994_s19  ;;  %v66_v24 = vstv %s996_s20  ;;  %v60_v29 = vstv %s992_s18  ;;  %s1072_s1 = sld [smem:[#allocation2 + $0x10]]  ;;  %s1076_s2 = sld [smem:[#allocation2 + $0x11]] }
  0x27   :  { %v86_v25 = vadd.f32 %v85_v10, %v82_v17  ;;  %v54_v26 = vadd.f32 %v53_v19, %v50_v15  ;;  %v64_v27 = vmul.f32 %v63_v23, %v43_v1  ;;  %v67_v28 = vmul.f32 %v828_v2, %v66_v24  ;;  %s1081_s30 = sld [smem:[#allocation4 + $0x4]]  ;;  %s1092_s7 = sld [smem:[#allocation4 + $0x5]] }
  0x28   :  { %v70_v30 = vstv %s998_s21  ;;  %v74_v31 = vstv %s1000_s22  ;;  %v91_v32 = vstv %s1002_s0  ;;  %v94_v37 = vstv %s1004_s23  ;;  %s853_s15 = sld [smem:[#allocation2 + $0x13]]  ;;  %s856_s16 = sld [smem:[#allocation2 + $0x15]] }
  0x29   :  { %v1030_v33 = vadd.f32 %v88_v21, %v86_v25  ;;  %v58_v34 = vadd.f32 %v57_v22, %v54_v26  ;;  %v68_v35 = vadd.f32 %v67_v28, %v64_v27  ;;  %v71_v36 = vmul.f32 %v829_v3, %v70_v30  ;;  %s857_s17 = sld [smem:[#allocation2 + $0x16]]  ;;  %s860_s18 = sld [smem:[#allocation2 + $0x18]] }
  0x2a   :  { %v98_v38 = vstv %s1008_s24  ;;  %v105_v39 = vstv %s1014_s25  ;;  %v108_v40 = vstv %s1016_s26  ;;  %v112_v48 = vstv %s1021_s27  ;;  %s861_s19 = sld [smem:[#allocation2 + $0x19]]  ;;  %s1165_s20 = sld [smem:[#allocation2 + $0x14]] }
  0x2b   :  { %v212_v41 = vrot.slane %v1030_v33, %v1006_v11  ;;  %v216_v42 = vrot.slane %v1030_v33, %v1010_v13  ;;  %v220_v43 = vrot.slane %v1030_v33, %v1012_v14  ;;  %v224_v44 = vrot.slane %v1030_v33, %v1018_v18  ;;  %s1167_s21 = sld [smem:[#allocation2 + $0x17]]  ;;  %s1169_s22 = sld [smem:[#allocation2 + $0x1a]] }
  0x2c   :  { %v1044_v45 = vadd.f32 %v60_v29, %v58_v34  ;;  %v72_v46 = vadd.f32 %v71_v36, %v68_v35  ;;  %v99_v47 = vmul.f32 %v98_v38, %v1030_v33  ;;  %v102_v35 = vstv %s1061_s28  ;;  %s1171_s0 = sld [smem:[#allocation4 + $0x6]]  ;;  %s1173_s23 = sld [smem:[#allocation4 + $0x7]] }
  0x2d   :  { %v229_v49 = vsel %vm153_vm0, %v212_v41, 0.0  ;;  %v230_v50 = vsel %vm153_vm0, %v216_v42, 0.0  ;;  %v232_v51 = vsel %vm153_vm0, %v220_v43, 0.0  ;;  %v234_v52 = vsel %vm153_vm0, %v224_v44, 0.0  ;;  %s1175_s24 = sld [smem:[#allocation4 + $0x8]]  ;;  %s1177_s25 = sld [smem:[#allocation2 + $0x1b]] }
  0x2e   :  { %v231_v53 = vadd.f32 %v230_v50, %v229_v49  ;;  %v136_v54 = vrot.slane %v1044_v45, %v1006_v11  ;;  %v140_v55 = vrot.slane %v1044_v45, %v1010_v13  ;;  %v144_v56 = vrot.slane %v1044_v45, %v1012_v14  ;;  %s1179_s26 = sld [smem:[#allocation2 + $0x1c]]  ;;  %s1185_s27 = sld [smem:[#allocation2 + $0x1d]] }
  0x2f   :  { %v148_v57 = vrot.slane %v1044_v45, %v1018_v18  ;;  %v75_v58 = vadd.f32 %v74_v31, %v72_v46  ;;  %v92_v59 = vmul.f32 %v91_v32, %v1044_v45  ;;  %v106_v60 = vmul.f32 %v105_v39, %v1044_v45  ;;  %s1187_s28 = sld [smem:[#allocation4 + $0x9]]  ;;  %s1204_s8 = sld [smem:[#allocation2 + $0x22]] }
  0x30   :  { %v233_v61 = vadd.f32 %v232_v51, %v231_v53  ;;  %v154_v62 = vsel %vm153_vm0, %v136_v54, 0.0  ;;  %v155_v63 = vsel %vm153_vm0, %v140_v55, 0.0  ;;  %v157_v0 = vsel %vm153_vm0, %v144_v56, 0.0  ;;  %s1208_s9 = sld [smem:[#allocation2 + $0x23]]  ;;  %s1213_s11 = sld [smem:[#allocation2 + $0x24]] }
  0x31   :  { %v156_v1 = vadd.f32 %v155_v63, %v154_v62  ;;  %v159_v2 = vsel %vm153_vm0, %v148_v57, 0.0  ;;  %v174_v3 = vrot.slane %v75_v58, %v1006_v11  ;;  %v178_v4 = vrot.slane %v75_v58, %v1010_v13  ;;  %s1210_s10 = sld [smem:[#allocation4 + $0xb]]  ;;  %s1217_s12 = sld [smem:[#allocation2 + $0x26]] }
  0x32   :  { %v235_v5 = vadd.f32 %v234_v52, %v233_v61  ;;  %v182_v6 = vrot.slane %v75_v58, %v1012_v14  ;;  %v186_v7 = vrot.slane %v75_v58, %v1018_v18  ;;  %v95_v8 = vmul.f32 %v94_v37, %v75_v58  ;;  %s1219_s13 = sld [smem:[#allocation2 + $0x27]]  ;;  %s1221_s14 = sld [smem:[#allocation4 + $0xc]] }
  0x33   :  { %v158_v9 = vadd.f32 %v157_v0, %v156_v1  ;;  %v191_v10 = vsel %vm153_vm0, %v174_v3, 0.0  ;;  %v192_v12 = vsel %vm153_vm0, %v178_v4, 0.0  ;;  %v611_v15 = vsel %vm153_vm0, %v136_v54, %v174_v3 }
  0x34   :  { %236 = vadd.xlane.f32.xlu1 %v235_v5  ;;  %v193_v16 = vadd.f32 %v192_v12, %v191_v10  ;;  %v194_v17 = vsel %vm153_vm0, %v182_v6, 0.0  ;;  %v196_v19 = vsel %vm153_vm0, %v186_v7, 0.0  ;;  %v612_v20 = vsel %vm153_vm0, %v140_v55, %v178_v4 }
  0x35   :  { %v160_v21 = vadd.f32 %v159_v2, %v158_v9  ;;  %v613_v22 = vsel %vm153_vm0, %v144_v56, %v182_v6  ;;  %v614_v23 = vsel %vm153_vm0, %v148_v57, %v186_v7  ;;  %v616_v24 = vsel %vm615_vm1, %v611_v15, %v212_v41 }
  0x36   :  { %v195_v25 = vadd.f32 %v194_v17, %v193_v16  ;;  %v617_v26 = vsel %vm615_vm1, %v612_v20, %v216_v42  ;;  %v618_v27 = vsel %vm615_vm1, %v613_v22, %v220_v43  ;;  %v619_v28 = vsel %vm615_vm1, %v614_v23, %v224_v44 }
  0x37   :  { %161 = vadd.xlane.f32.xlu0 %v160_v21  ;;  %v624_v29 = vcombine.low %v616_v24, %v617_v26  ;;  %v625_v30 = vcombine.low %v618_v27, %v619_v28  ;;  %v96_v31 = vadd.f32 %v95_v8, %v92_v59  ;;  %v109_v32 = vmul.f32 %v108_v40, %v75_v58 }
  0x38   :  { %v197_v34 = vadd.f32 %v196_v19, %v195_v25  ;;  %v113_v36 = vmul.f32 %v112_v48, %v1030_v33  ;;  %v119_v37 = vstv %s1067_s29  ;;  %v122_v40 = vstv %s1072_s1  ;;  %s1193_s29 = sld [smem:[#allocation2 + $0x1e]]  ;;  %s1195_s1 = sld [smem:[#allocation2 + $0x1f]] }
  0x39   :  { %628 = vst [vmem:[%s1381_s3] sm:$0x77] %v624_v29  ;;  %629 = vst [vmem:[%s1381_s3 + $0x8] sm:$0x77] %v625_v30  ;;  %v100_v38 = vadd.f32 %v99_v47, %v96_v31  ;;  %v110_v39 = vadd.f32 %v109_v32, %v106_v60  ;;  %v120_v41 = vmul.f32 %v119_v37, %v1044_v45  ;;  %v126_v43 = vstv %s1076_s2  ;;  %s1198_s2 = sld [smem:[#allocation2 + $0x20]]  ;;  %s1215_s3 = sld [smem:[#allocation2 + $0x25]] }
  0x3a   :  { %v123_v42 = vmul.f32 %v122_v40, %v75_v58  ;;  %v116_v48 = vstv %s1081_s30  ;;  %v127_v49 = vmul.f32 %v126_v43, %v1030_v33  ;;  %v130_v55 = vstv %s1092_s7  ;;  %s1200_s30 = sld [smem:[#allocation4 + $0xa]]  ;;  %s1202_s7 = sld [smem:[#allocation2 + $0x21]] }
  0x3b   :  { %198 = vadd.xlane.f32.xlu0 %v197_v34  ;;  %v1106_v44 = vadd.f32 %v102_v35, %v100_v38  ;;  %v114_v46 = vadd.f32 %v113_v36, %v110_v39 }
  0x3c   :  { %v124_v50 = vadd.f32 %v123_v42, %v120_v41 }
  0x3d   :  { %v250_v51 = vrot.slane %v1106_v44, %v1006_v11  ;;  %v254_v47 = vrot.slane %v1106_v44, %v1010_v13  ;;  %v258_v45 = vrot.slane %v1106_v44, %v1012_v14  ;;  %v262_v52 = vrot.slane %v1106_v44, %v1018_v18 }
  0x3e   :  { %v1118_v53 = vadd.f32 %v116_v48, %v114_v46  ;;  %v128_v54 = vadd.f32 %v127_v49, %v124_v50 }
  0x3f   :  { %v267_v56 = vsel %vm153_vm0, %v250_v51, 0.0  ;;  %v268_v33 = vsel %vm153_vm0, %v254_v47, 0.0  ;;  %v270_v57 = vsel %vm153_vm0, %v258_v45, 0.0  ;;  %v272_v62 = vsel %vm153_vm0, %v262_v52, 0.0 }
  0x40   :  { %v269_v58 = vadd.f32 %v268_v33, %v267_v56  ;;  %v287_v59 = vrot.slane %v1118_v53, %v1006_v11  ;;  %v291_v60 = vrot.slane %v1118_v53, %v1010_v13  ;;  %v295_v61 = vrot.slane %v1118_v53, %v1012_v14 }
  0x41   :  { %v299_v63 = vrot.slane %v1118_v53, %v1018_v18  ;;  %v1133_v0 = vadd.f32 %v130_v55, %v128_v54 }
  0x42   :  { %v271_v1 = vadd.f32 %v270_v57, %v269_v58  ;;  %v304_v2 = vsel %vm153_vm0, %v287_v59, 0.0  ;;  %v305_v3 = vsel %vm153_vm0, %v291_v60, 0.0  ;;  %v307_v4 = vsel %vm153_vm0, %v295_v61, 0.0 }
  0x43   :  { %v306_v5 = vadd.f32 %v305_v3, %v304_v2  ;;  %v309_v6 = vsel %vm153_vm0, %v299_v63, 0.0  ;;  %v630_v7 = vsel %vm153_vm0, %v250_v51, %v287_v59  ;;  %v631_v8 = vsel %vm153_vm0, %v254_v47, %v291_v60 }
  0x44   :  { %v273_v9 = vadd.f32 %v272_v62, %v271_v1  ;;  %v632_v10 = vsel %vm153_vm0, %v258_v45, %v295_v61  ;;  %v633_v12 = vsel %vm153_vm0, %v262_v52, %v299_v63  ;;  %v325_v15 = vrot.slane %v1133_v0, %v1006_v11 }
  0x45   :  { %v308_v16 = vadd.f32 %v307_v4, %v306_v5  ;;  %v329_v17 = vrot.slane %v1133_v0, %v1010_v13  ;;  %v333_v19 = vrot.slane %v1133_v0, %v1012_v14  ;;  %v337_v20 = vrot.slane %v1133_v0, %v1018_v18 }
  0x46   :  { %274 = vadd.xlane.f32.xlu1 %v273_v9  ;;  %v342_v21 = vsel %vm153_vm0, %v325_v15, 0.0  ;;  %v634_v22 = vsel %vm615_vm1, %v630_v7, %v325_v15 }
  0x47   :  { %v310_v23 = vadd.f32 %v309_v6, %v308_v16  ;;  %v343_v24 = vsel %vm153_vm0, %v329_v17, 0.0  ;;  %v345_v25 = vsel %vm153_vm0, %v333_v19, 0.0  ;;  %v635_v27 = vsel %vm615_vm1, %v631_v8, %v329_v17 }
  0x48   :  { %v344_v26 = vadd.f32 %v343_v24, %v342_v21  ;;  %v636_v28 = vsel %vm615_vm1, %v632_v10, %v333_v19  ;;  %v637_v29 = vsel %vm615_vm1, %v633_v12, %v337_v20  ;;  %v347_v30 = vsel %vm153_vm0, %v337_v20, 0.0 }
  0x49   :  { %311 = vadd.xlane.f32.xlu0 %v310_v23  ;;  %v642_v31 = vcombine.low %v634_v22, %v635_v27  ;;  %v643_v32 = vcombine.low %v636_v28, %v637_v29  ;;  %v363_v21 = vstv %s853_s15  ;;  %v374_v22 = vstv %s856_s16  ;;  %s1225_s15 = sld [smem:[#allocation2 + $0x29]]  ;;  %s1227_s16 = sld [smem:[#allocation2 + $0x2a]] }
  0x4a   :  { %v346_v34 = vadd.f32 %v345_v25, %v344_v26  ;;  %v377_v23 = vstv %s857_s17  ;;  %v388_v24 = vstv %s860_s18  ;;  %v391_v25 = vstv %s861_s19  ;;  %s1231_s17 = sld [smem:[#allocation4 + $0xd]]  ;;  %s1233_s18 = sld [smem:[#allocation2 + $0x2b]] }
  0x4b   :  { %646 = vst [vmem:[%s1382_s4] sm:$0x77] %v642_v31  ;;  %647 = vst [vmem:[%s1382_s4 + $0x8] sm:$0x77] %v643_v32  ;;  %s852_s4 = sld [smem:[#allocation2 + $0x12]]  ;;  %v364_v27 = vmul.f32 %v363_v21, %v1118_v53  ;;  %v375_v28 = vmul.f32 %v374_v22, %v1106_v44  ;;  %v378_v29 = vmul.f32 %v377_v23, %v1118_v53  ;;  %v381_v31 = vstv %s1167_s21 }
  0x4c   :  { %v348_v35 = vadd.f32 %v347_v30, %v346_v34  ;;  %v367_v30 = vstv %s1165_s20  ;;  %v389_v32 = vmul.f32 %v388_v24, %v1106_v44  ;;  %v392_v34 = vmul.f32 %v391_v25, %v1118_v53  ;;  %s1236_s20 = sld [smem:[#allocation2 + $0x2c]] }
  0x4e   :  { %349 = vadd.xlane.f32.xlu1 %v348_v35  ;;  %v395_v35 = vstv %s1169_s22  ;;  %v393_v53 = vadd.f32 %v392_v34, %v389_v32 }
  0x51   :  { %v360_v20 = vstv %s852_s4  ;;  %s1223_s4 = sld [smem:[#allocation2 + $0x28]] }
  0x52   :  { %v361_v26 = vmul.f32 %v360_v20, %v1106_v44  ;;  %v382_v44 = vmul.f32 %v381_v31, %v1133_v0 }
  0xc1   :  { %v237_v36 = vpop.xlane.xlu1 %236 }
  0xc2   :  { %v238_v37 = vrot.slane %v237_v36, 4 }
  0xc4   :  { %v239_v38 = vadd.f32 %v238_v37, %v237_v36  ;;  %v162_v39 = vpop.xlane.xlu0 %161  ;;  %v365_v36 = vadd.f32 %v364_v27, %v361_v26  ;;  %v368_v37 = vmul.f32 %v367_v30, %v1133_v0 }
  0xc5   :  { %v163_v41 = vrot.slane %v162_v39, 4 }
  0xc6   :  { %v240_v42 = vrot.slane %v239_v38, 2 }
  0xc7   :  { %v164_v40 = vadd.f32 %v163_v41, %v162_v39  ;;  %v396_v39 = vmul.f32 %v395_v35, %v1133_v0  ;;  %v369_v41 = vadd.f32 %v368_v37, %v365_v36  ;;  %v371_v0 = vstv %s1171_s0 }
  0xc8   :  { %v199_v43 = vpop.xlane.xlu0 %198  ;;  %v241_v51 = vadd.f32 %v240_v42, %v239_v38  ;;  %v379_v38 = vadd.f32 %v378_v29, %v375_v28  ;;  %v385_v42 = vstv %s1173_s23 }
  0xc9   :  { %v165_v46 = vrot.slane %v164_v40, 2  ;;  %v200_v48 = vrot.slane %v199_v43, 4 }
  0xca   :  { %v242_v55 = vrot.slane %v241_v51, 1 }
  0xcb   :  { %v201_v49 = vadd.f32 %v200_v48, %v199_v43  ;;  %v166_v50 = vadd.f32 %v165_v46, %v164_v40  ;;  %v383_v40 = vadd.f32 %v382_v44, %v379_v38  ;;  %v397_v43 = vadd.f32 %v396_v39, %v393_v53 }
  0xcc   :  { %v243_v59 = vadd.f32 %v242_v55, %v241_v51  ;;  %v399_v46 = vstv %s1175_s24  ;;  %v406_v48 = vstv %s1177_s25  ;;  %v423_v55 = vstv %s1195_s1  ;;  %s1259_s24 = sld [smem:[#allocation4 + $0xe]] }
  0xcd   :  { %v202_v47 = vrot.slane %v201_v49, 2  ;;  %v167_v45 = vrot.slane %v166_v50, 1  ;;  %v386_v51 = vadd.f32 %v385_v42, %v383_v40 }
  0xcf   :  { %v168_v52 = vadd.f32 %v167_v45, %v166_v50  ;;  %v203_v54 = vadd.f32 %v202_v47, %v201_v49  ;;  %v409_v49 = vstv %s1179_s26  ;;  %v372_v50 = vadd.f32 %v371_v0, %v369_v41 }
  0xd0   :  { %v413_v47 = vstv %s1185_s27  ;;  %v417_v45 = vstv %s1187_s28 }
  0xd1   :  { %888 = vpush %v168_v52  ;;  %v204_v56 = vrot.slane %v203_v54, 1  ;;  %v400_v52 = vadd.f32 %v399_v46, %v397_v43 }
  0xd2   :  { %v487_v53 = vstv %s1259_s24 }
  0xd3   :  { %v275_v33 = vpop.xlane.xlu1 %274  ;;  %v205_v57 = vadd.f32 %v204_v56, %v203_v54  ;;  %v420_v54 = vstv %s1193_s29  ;;  %v427_v56 = vstv %s1198_s2 }
  0xd4   :  { %v276_v58 = vrot.slane %v275_v33, 4 }
  0xd5   :  { %890 = vpush %v205_v57  ;;  %v434_v57 = vstv %s1202_s7 }
  0xd6   :  { %v277_v60 = vadd.f32 %v276_v58, %v275_v33  ;;  %v312_v61 = vpop.xlane.xlu0 %311  ;;  %892 = vpush %v243_v59  ;;  %v431_v33 = vstv %s1200_s30  ;;  %v437_v58 = vstv %s1204_s8  ;;  %v441_v59 = vstv %s1208_s9 }
  0xd7   :  { %v313_v62 = vrot.slane %v312_v61, 4 }
  0xd8   :  { %v278_v63 = vrot.slane %v277_v60, 2 }
  0xd9   :  { %v314_v1 = vadd.f32 %v313_v62, %v312_v61  ;;  %v448_v61 = vstv %s1213_s11  ;;  %v451_v62 = vstv %s1215_s3 }
  0xda   :  { %v279_v2 = vadd.f32 %v278_v63, %v277_v60  ;;  %v445_v60 = vstv %s1210_s10  ;;  %v455_v63 = vstv %s1217_s12 }
  0xdb   :  { %v315_v3 = vrot.slane %v314_v1, 2  ;;  %v350_v4 = vpop.xlane.xlu1 %349 }
  0xdc   :  { %v351_v5 = vrot.slane %v350_v4, 4  ;;  %v280_v6 = vrot.slane %v279_v2, 1 }
  0xdd   :  { %v316_v7 = vadd.f32 %v315_v3, %v314_v1  ;;  %v462_v3 = vstv %s1219_s13 }
  0xde   :  { %v352_v8 = vadd.f32 %v351_v5, %v350_v4  ;;  %v281_v9 = vadd.f32 %v280_v6, %v279_v2  ;;  %v459_v2 = vstv %s1221_s14  ;;  %v465_v4 = vstv %s1223_s4 }
  0xdf   :  { %v317_v10 = vrot.slane %v316_v7, 1 }
  0xe0   :  { %v353_v12 = vrot.slane %v352_v8, 2  ;;  %894 = vpush %v281_v9  ;;  %v473_v9 = vstv %s1231_s17 }
  0xe1   :  { %v318_v15 = vadd.f32 %v317_v10, %v316_v7  ;;  %v476_v10 = vstv %s1227_s16 }
  0xe2   :  { %v354_v16 = vadd.f32 %v353_v12, %v352_v8  ;;  %v469_v8 = vstv %s1225_s15  ;;  %v479_v12 = vstv %s1233_s18 }
  0xe3   :  { %896 = vpush %v318_v15  ;;  %v483_v15 = vstv %s1236_s20 }
  0xe4   :  { %v355_v17 = vrot.slane %v354_v16, 1 }
  0xe6   :  { %v356_v19 = vadd.f32 %v355_v17, %v354_v16 }
  0xe8   :  { %898 = vpush %v356_v19 }
 0x102   :  { %s889_s19 = spop %888 }
 0x106   :  { %s891_s21 = spop %890 }
 0x107   :  { %s207_s22 = sadd.f32 %s891_s21, %s889_s19  ;;  %s893_s0 = spop %892 }
 0x109   :  { %s1245_s23 = sadd.f32 %s893_s0, %s207_s22 }
 0x10b   :  { %v401_v1 = vstv %s1245_s23 }
 0x10c   :  { %v1261_v5 = vadd.f32 %v401_v1, %v372_v50  ;;  %v1263_v6 = vadd.f32 %v401_v1, %v386_v51  ;;  %v1265_v7 = vadd.f32 %v401_v1, %v400_v52 }
 0x10e   :  { %v407_v16 = vmul.f32 %v406_v48, %v1261_v5  ;;  %v410_v17 = vmul.f32 %v409_v49, %v1263_v6  ;;  %v414_v19 = vmul.f32 %v413_v47, %v1265_v7  ;;  %v421_v20 = vmul.f32 %v420_v54, %v1261_v5 }
 0x10f   :  { %v424_v21 = vmul.f32 %v423_v55, %v1263_v6  ;;  %v428_v22 = vmul.f32 %v427_v56, %v1265_v7  ;;  %v435_v23 = vmul.f32 %v434_v57, %v1261_v5  ;;  %v438_v24 = vmul.f32 %v437_v58, %v1263_v6 }
 0x110   :  { %v411_v25 = vadd.f32 %v410_v17, %v407_v16  ;;  %v442_v26 = vmul.f32 %v441_v59, %v1265_v7  ;;  %v493_v27 = vrot.slane %v1261_v5, %v1006_v11  ;;  %v497_v28 = vrot.slane %v1261_v5, %v1010_v13 }
 0x111   :  { %v425_v29 = vadd.f32 %v424_v21, %v421_v20  ;;  %v439_v30 = vadd.f32 %v438_v24, %v435_v23  ;;  %v501_v31 = vrot.slane %v1261_v5, %v1012_v14  ;;  %v505_v32 = vrot.slane %v1261_v5, %v1018_v18 }
 0x112   :  { %v415_v34 = vadd.f32 %v414_v19, %v411_v25  ;;  %v510_v35 = vsel %vm153_vm0, %v493_v27, 0.0  ;;  %v511_v36 = vsel %vm153_vm0, %v497_v28, 0.0  ;;  %v530_v37 = vrot.slane %v1263_v6, %v1006_v11 }
 0x113   :  { %v429_v38 = vadd.f32 %v428_v22, %v425_v29  ;;  %v443_v44 = vadd.f32 %v442_v26, %v439_v30  ;;  %v512_v39 = vadd.f32 %v511_v36, %v510_v35  ;;  %v513_v40 = vsel %vm153_vm0, %v501_v31, 0.0 }
 0x114   :  { %v418_v41 = vadd.f32 %v417_v45, %v415_v34  ;;  %v515_v0 = vsel %vm153_vm0, %v505_v32, 0.0  ;;  %v534_v42 = vrot.slane %v1263_v6, %v1010_v13  ;;  %v538_v49 = vrot.slane %v1263_v6, %v1012_v14 }
 0x115   :  { %v432_v43 = vadd.f32 %v431_v33, %v429_v38  ;;  %v446_v46 = vadd.f32 %v445_v60, %v443_v44  ;;  %v514_v48 = vadd.f32 %v513_v40, %v512_v39  ;;  %v547_v52 = vsel %vm153_vm0, %v530_v37, 0.0 }
 0x116   :  { %v449_v50 = vmul.f32 %v448_v61, %v418_v41  ;;  %v463_v51 = vmul.f32 %v462_v3, %v418_v41  ;;  %v477_v47 = vmul.f32 %v476_v10, %v418_v41  ;;  %v542_v56 = vrot.slane %v1263_v6, %v1018_v18 }
 0x117   :  { %v452_v54 = vmul.f32 %v451_v62, %v432_v43  ;;  %v456_v45 = vmul.f32 %v455_v63, %v446_v46  ;;  %v466_v55 = vmul.f32 %v465_v4, %v432_v43  ;;  %v470_v57 = vmul.f32 %v469_v8, %v446_v46 }
 0x118   :  { %v480_v58 = vmul.f32 %v479_v12, %v432_v43  ;;  %v516_v59 = vadd.f32 %v515_v0, %v514_v48  ;;  %v548_v33 = vsel %vm153_vm0, %v534_v42, 0.0  ;;  %v484_v16 = vmul.f32 %v483_v15, %v446_v46 }
 0x119   :  { %v453_v60 = vadd.f32 %v452_v54, %v449_v50  ;;  %v467_v1 = vadd.f32 %v466_v55, %v463_v51  ;;  %v549_v61 = vadd.f32 %v548_v33, %v547_v52  ;;  %v550_v62 = vsel %vm153_vm0, %v538_v49, 0.0 }
 0x11a   :  { %v481_v3 = vadd.f32 %v480_v58, %v477_v47  ;;  %517 = vadd.xlane.f32.xlu0 %v516_v59  ;;  %v568_v63 = vrot.slane %v1265_v7, %v1006_v11  ;;  %v572_v4 = vrot.slane %v1265_v7, %v1010_v13  ;;  %v576_v17 = vrot.slane %v1265_v7, %v1012_v14 }
 0x11b   :  { %v457_v8 = vadd.f32 %v456_v45, %v453_v60  ;;  %v471_v10 = vadd.f32 %v470_v57, %v467_v1  ;;  %v551_v12 = vadd.f32 %v550_v62, %v549_v61  ;;  %v552_v15 = vsel %vm153_vm0, %v542_v56, 0.0 }
 0x11c   :  { %v485_v19 = vadd.f32 %v484_v16, %v481_v3  ;;  %v585_v20 = vsel %vm153_vm0, %v568_v63, 0.0  ;;  %v586_v21 = vsel %vm153_vm0, %v572_v4, 0.0  ;;  %v580_v26 = vrot.slane %v1265_v7, %v1018_v18 }
 0x11d   :  { %v460_v22 = vadd.f32 %v459_v2, %v457_v8  ;;  %v474_v23 = vadd.f32 %v473_v9, %v471_v10  ;;  %v553_v24 = vadd.f32 %v552_v15, %v551_v12  ;;  %v587_v27 = vadd.f32 %v586_v21, %v585_v20 }
 0x11e   :  { %v488_v25 = vadd.f32 %v487_v53, %v485_v19  ;;  %v588_v28 = vsel %vm153_vm0, %v576_v17, 0.0  ;;  %v590_v51 = vsel %vm153_vm0, %v580_v26, 0.0 }
 0x11f   :  { %v733_v29 = vrot.slane %v460_v22, %v1006_v11  ;;  %v737_v30 = vrot.slane %v460_v22, %v1010_v13  ;;  %v741_v31 = vrot.slane %v460_v22, %v1012_v14  ;;  %v745_v32 = vrot.slane %v460_v22, %v1018_v18  ;;  %554 = vadd.xlane.f32.xlu1 %v553_v24 }
 0x120   :  { %v754_v2 = vrot.slane %v474_v23, %v1006_v11  ;;  %v758_v9 = vrot.slane %v474_v23, %v1010_v13  ;;  %v762_v34 = vrot.slane %v474_v23, %v1012_v14  ;;  %v766_v35 = vrot.slane %v474_v23, %v1018_v18 }
 0x121   :  { %v775_v36 = vrot.slane %v488_v25, %v1006_v11  ;;  %v779_v37 = vrot.slane %v488_v25, %v1010_v13  ;;  %v783_v38 = vrot.slane %v488_v25, %v1012_v14  ;;  %v787_v44 = vrot.slane %v488_v25, %v1018_v18 }
 0x122   :  { %v792_v53 = vsel %vm153_vm0, %v733_v29, %v754_v2  ;;  %v793_v39 = vsel %vm153_vm0, %v737_v30, %v758_v9  ;;  %v794_v41 = vsel %vm153_vm0, %v741_v31, %v762_v34  ;;  %v795_v40 = vsel %vm153_vm0, %v745_v32, %v766_v35 }
 0x123   :  { %v796_v0 = vsel %vm615_vm1, %v792_v53, %v775_v36  ;;  %v797_v42 = vsel %vm615_vm1, %v793_v39, %v779_v37  ;;  %v798_v43 = vsel %vm615_vm1, %v794_v41, %v783_v38  ;;  %v799_v46 = vsel %vm615_vm1, %v795_v40, %v787_v44 }
 0x124   :  { %v804_v48 = vcombine.low %v796_v0, %v797_v42  ;;  %v805_v49 = vcombine.low %v798_v43, %v799_v46  ;;  %v589_v50 = vadd.f32 %v588_v28, %v587_v27 }
 0x126   :  { %808 = vst [vmem:[%s1384_s6] sm:$0x77] %v804_v48  ;;  %809 = vst [vmem:[%s1384_s6 + $0x8] sm:$0x77] %v805_v49  ;;  %v591_v47 = vadd.f32 %v590_v51, %v589_v50  ;;  %s895_s6 = spop %894 }
 0x127   :  { %s897_s29 = spop %896 }
 0x128   :  { %592 = vadd.xlane.f32.xlu0 %v591_v47  ;;  %s320_s1 = sadd.f32 %s897_s29, %s895_s6  ;;  %s899_s2 = spop %898 }
 0x12a   :  { %s358_s30 = sadd.f32 %s899_s2, %s320_s1 }
 0x12c   :  { %s602_s9 = sadd.f32 %s358_s30, %s1245_s23 }
 0x12e   :  { %s603_s12 = smul.f32 1536.0, %s602_s9 }
 0x12f   :  { %s605_s13 = smul.f32 2.0, %s602_s9 }
 0x1a7   :  { %v518_v52 = vpop.xlane.xlu0 %517 }
 0x1a8   :  { %v519_v54 = vrot.slane %v518_v52, 4 }
 0x1aa   :  { %v520_v45 = vadd.f32 %v519_v54, %v518_v52 }
 0x1ac   :  { %v521_v55 = vrot.slane %v520_v45, 2  ;;  %v555_v56 = vpop.xlane.xlu1 %554 }
 0x1ad   :  { %v556_v57 = vrot.slane %v555_v56, 4 }
 0x1ae   :  { %v522_v58 = vadd.f32 %v521_v55, %v520_v45 }
 0x1af   :  { %v557_v59 = vadd.f32 %v556_v57, %v555_v56 }
 0x1b0   :  { %v523_v33 = vrot.slane %v522_v58, 1 }
 0x1b1   :  { %v558_v60 = vrot.slane %v557_v59, 2 }
 0x1b2   :  { %v524_v1 = vadd.f32 %v523_v33, %v522_v58 }
 0x1b3   :  { %v559_v16 = vadd.f32 %v558_v60, %v557_v59 }
 0x1b4   :  { %900 = vpush %v524_v1 }
 0x1b5   :  { %v593_v61 = vpop.xlane.xlu0 %592  ;;  %v560_v3 = vrot.slane %v559_v16, 1 }
 0x1b6   :  { %v594_v62 = vrot.slane %v593_v61, 4 }
 0x1b7   :  { %v561_v63 = vadd.f32 %v560_v3, %v559_v16 }
 0x1b8   :  { %v595_v4 = vadd.f32 %v594_v62, %v593_v61 }
 0x1b9   :  { %902 = vpush %v561_v63 }
 0x1ba   :  { %v596_v8 = vrot.slane %v595_v4, 2 }
 0x1bc   :  { %v597_v10 = vadd.f32 %v596_v8, %v595_v4 }
 0x1be   :  { %v598_v12 = vrot.slane %v597_v10, 1 }
 0x1c0   :  { %v599_v17 = vadd.f32 %v598_v12, %v597_v10 }
 0x1c2   :  { %904 = vpush %v599_v17 }
 0x1e5   :  { %s901_s7 = spop %900 }
 0x1ea   :  { %s903_s8 = spop %902 }
 0x1eb   :  { %s563_s10 = sadd.f32 %s903_s8, %s901_s7 }
 0x1f3   :  { %s905_s11 = spop %904 }
 0x1f4   :  { %s601_s3 = sadd.f32 %s905_s11, %s563_s10 }
 0x1f6   :  { %s604_s14 = sadd.f32 %s603_s12, %s601_s3 }
 0x1f8   :  { %s606_s4 = sadd.f32 %s605_s13, %s604_s14 }
 0x1fa   :  { %v607_v19 = vstv %s606_s4 }
 0x1fb   :  { %v608_v15 = vadd.f32 %v607_v19, %v1261_v5  ;;  %v609_v20 = vadd.f32 %v607_v19, %v1263_v6  ;;  %v610_v21 = vadd.f32 %v607_v19, %v1265_v7 }
 0x1fd   :  { %v652_v22 = vrot.slane %v608_v15, %v1006_v11  ;;  %v656_v23 = vrot.slane %v608_v15, %v1010_v13  ;;  %v660_v24 = vrot.slane %v608_v15, %v1012_v14  ;;  %v664_v25 = vrot.slane %v608_v15, %v1018_v18 }
 0x1fe   :  { %v673_v26 = vrot.slane %v609_v20, %v1006_v11  ;;  %v677_v27 = vrot.slane %v609_v20, %v1010_v13  ;;  %v681_v28 = vrot.slane %v609_v20, %v1012_v14  ;;  %v685_v5 = vrot.slane %v609_v20, %v1018_v18 }
 0x1ff   :  { %v694_v6 = vrot.slane %v610_v21, %v1006_v11  ;;  %v698_v7 = vrot.slane %v610_v21, %v1010_v13  ;;  %v702_v29 = vrot.slane %v610_v21, %v1012_v14  ;;  %v706_v30 = vrot.slane %v610_v21, %v1018_v18 }
 0x200   :  { %v711_v31 = vsel %vm153_vm0, %v652_v22, %v673_v26  ;;  %v712_v32 = vsel %vm153_vm0, %v656_v23, %v677_v27  ;;  %v713_v2 = vsel %vm153_vm0, %v660_v24, %v681_v28  ;;  %v714_v9 = vsel %vm153_vm0, %v664_v25, %v685_v5 }
 0x201   :  { %v715_v34 = vsel %vm615_vm1, %v711_v31, %v694_v6  ;;  %v716_v35 = vsel %vm615_vm1, %v712_v32, %v698_v7  ;;  %v717_v11 = vsel %vm615_vm1, %v713_v2, %v702_v29  ;;  %v718_v13 = vsel %vm615_vm1, %v714_v9, %v706_v30 }
 0x202   :  { %v723_v36 = vcombine.low %v715_v34, %v716_v35  ;;  %v724_v14 = vcombine.low %v717_v11, %v718_v13 }
 0x204   :  { %727 = vst [vmem:[%s1383_s5] sm:$0x77] %v723_v36  ;;  %728 = vst [vmem:[%s1383_s5 + $0x8] sm:$0x77] %v724_v14 }
 0x205   :  { %826 = vsyncpa [#allocation3], 1 }
 0x206   :  { %827 = vsyncpa [#allocation5], 1 }

</bundles_post_ra>
